<compile_context>
chip_gen: v5e
topology: v5e:2x2
jax: 0.10.0
libtpu: 0.0.40
codegen_flags: <defaults>
</compile_context>

<pallas_src>
import functools
import math

import jax
import jax.numpy as jnp
from jax import lax
from jax.experimental import pallas as pl
from jax.experimental.pallas import tpu as pltpu

_EPS = 1e-8  # F.cosine_similarity default eps


def _round_up(x, m):
    return ((x + m - 1) // m) * m


def _prenorm_kernel(xi_ref, xj_ref, oi_ref, oj_ref, *, scale):
    """Row-wise L2 normalize both halves and fold in 1/sqrt(T)."""

    def _norm(x):
        xf = x.astype(jnp.float32)
        sq = jnp.sum(xf * xf, axis=-1, keepdims=True)
        # TODO(synk): rows with ||x||^2 <= eps^2 deviate slightly from
        # F.cosine_similarity's per-norm clamp (degenerate embeddings only).
        inv = lax.rsqrt(jnp.maximum(sq, _EPS * _EPS)) * scale
        return xf * inv

    oi_ref[...] = _norm(xi_ref[...]).astype(oi_ref.dtype)
    oj_ref[...] = _norm(xj_ref[...]).astype(oj_ref.dtype)


def _ntxent_kernel(qi_ref, qj_ref, ki_ref, kj_ref, out_ref, acc_i, acc_j,
                   *, self_term, pad_term):
    """One (row-tile i, column-tile j) step over the (2B, 2B) similarity grid.

    Inputs are pre-normalized and pre-scaled by 1/sqrt(T), so every dot
    product directly yields sim / T.
    """
    j = pl.program_id(1)
    n_j = pl.num_programs(1)

    @pl.when(j == 0)
    def _init():
        acc_i[...] = jnp.zeros_like(acc_i)
        acc_j[...] = jnp.zeros_like(acc_j)

    qi = qi_ref[...]
    qj = qj_ref[...]
    ki = ki_ref[...]
    kj = kj_ref[...]

    # A @ B.T via contraction on dim 1 of both operands (no transpose
    # materialized; MXU, f32 accumulation).
    dn = (((1,), (1,)), ((), ()))
    s_ii = lax.dot_general(qi, ki, dn, preferred_element_type=jnp.float32)
    s_ij = lax.dot_general(qi, kj, dn, preferred_element_type=jnp.float32)
    s_ji = lax.dot_general(qj, ki, dn, preferred_element_type=jnp.float32)
    s_jj = lax.dot_general(qj, kj, dn, preferred_element_type=jnp.float32)

    # Elementwise accumulation; the lane reduction is deferred to finalize.
    acc_i[...] += jnp.exp(s_ii) + jnp.exp(s_ij)
    acc_j[...] += jnp.exp(s_ji) + jnp.exp(s_jj)

    @pl.when(j == n_j - 1)
    def _finalize():
        # Single lane reduce per row tile; remove the self term exp(1/T) and
        # the padded-column contributions (exp(0) == 1 each) analytically.
        denom_i = (jnp.sum(acc_i[...], axis=-1, keepdims=True)
                   - (self_term + pad_term))
        denom_j = (jnp.sum(acc_j[...], axis=-1, keepdims=True)
                   - (self_term + pad_term))
        # positives / T == (n_i / sqrt(T)) . (n_j / sqrt(T)) for matching rows.
        pos_over_t = jnp.sum(qi.astype(jnp.float32) * qj.astype(jnp.float32),
                             axis=-1, keepdims=True)
        # -log(exp(p/T)/den) folded to log(den) - p/T; emit the combined
        # per-row loss for both halves of this row tile.
        out_ref[...] = (jnp.log(jnp.maximum(denom_i, 1e-30))
                        + jnp.log(jnp.maximum(denom_j, 1e-30))
                        - 2.0 * pos_over_t)


def contrastive_loss(emb_i, emb_j, temperature=0.5, mxu_dtype=None):
    """Pallas implementation of ContrastiveLoss.forward(emb_i, emb_j).

    mxu_dtype: dtype fed to the MXU matmuls.  Defaults to the input dtype so
    f32 inputs match the f32 reference bit-for-bit-ish; pass jnp.bfloat16 for
    4-8x MXU throughput at ~1e-3 loss error when D is large.
    """
    assert emb_i.shape == emb_j.shape and emb_i.ndim == 2
    assert temperature > 0.0
    b, d = emb_i.shape
    if mxu_dtype is None:
        mxu_dtype = emb_i.dtype

    # Lane-dense feature dim (zeros change neither dot products nor norms).
    d_pad = _round_up(d, 128)

    # Tile / batch-pad selection: multiples of 8 (sublane), capped at 256 so
    # the working set fits v7x's 64 MiB VMEM; >= 2 row tiles whenever possible
    # so v7x megacore can shard the "parallel" row axis.  Never fall back to
    # whole-array blocks for large batches.
    b8 = _round_up(b, 8)
    if b8 >= 512:
        tile = 256
        b_pad = _round_up(b, tile)
    elif b8 >= 16:
        b_pad = _round_up(b, 16)
        tile = b_pad // 2
    else:
        b_pad = b8
        tile = b_pad
    tm = tn = tile
    g_rows = b_pad // tm
    g_cols = b_pad // tn

    pad = ((0, b_pad - b), (0, d_pad - d))
    emb_i_p = jnp.pad(emb_i, pad)
    emb_j_p = jnp.pad(emb_j, pad)

    # ---- Pass 1: normalize rows once, fold in 1/sqrt(T). ----
    scale = 1.0 / math.sqrt(float(temperature))
    row_block_1d = pl.BlockSpec((tm, d_pad), lambda i: (i, 0))
    zi, zj = pl.pallas_call(
        functools.partial(_prenorm_kernel, scale=scale),
        out_shape=(jax.ShapeDtypeStruct((b_pad, d_pad), mxu_dtype),
                   jax.ShapeDtypeStruct((b_pad, d_pad), mxu_dtype)),
        grid_spec=pltpu.PrefetchScalarGridSpec(
            num_scalar_prefetch=0,
            grid=(g_rows,),
            in_specs=[row_block_1d, row_block_1d],
            out_specs=[row_block_1d, row_block_1d]),
        compiler_params=pltpu.CompilerParams(
            dimension_semantics=("parallel",)),
    )(emb_i_p, emb_j_p)

    # ---- Pass 2: tiled NT-Xent over the implicit (2B, 2B) similarity. ----
    self_term = math.exp(1.0 / float(temperature))      # exp(self-sim / T)
    pad_term = 2.0 * float(b_pad - b)                    # padded cols * exp(0)
    kernel = functools.partial(_ntxent_kernel,
                               self_term=self_term, pad_term=pad_term)

    q_spec = pl.BlockSpec((tm, d_pad), lambda i, j: (i, 0))
    k_spec = pl.BlockSpec((tn, d_pad), lambda i, j: (j, 0))

    partial_losses = pl.pallas_call(
        kernel,
        out_shape=jax.ShapeDtypeStruct((b_pad, 1), jnp.float32),
        grid_spec=pltpu.PrefetchScalarGridSpec(
            num_scalar_prefetch=0,
            grid=(g_rows, g_cols),
            in_specs=[q_spec, q_spec, k_spec, k_spec],
            out_specs=pl.BlockSpec((tm, 1), lambda i, j: (i, 0)),
            scratch_shapes=[pltpu.VMEM((tm, tn), jnp.float32),
                            pltpu.VMEM((tm, tn), jnp.float32)]),
        compiler_params=pltpu.CompilerParams(
            dimension_semantics=("parallel", "arbitrary"),
            # Generous, but leaves headroom on v7x's 64 MiB per-TC VMEM.
            vmem_limit_bytes=48 * 1024 * 1024),
    )(zi, zj, zi, zj)

    # Padded rows are dropped by slicing (their kernel outputs are unused).
    return jnp.sum(partial_losses[:b, 0]) / (2 * b)


def _reference_loss(emb_i, emb_j, temperature=0.5):
    """Pure-JAX reference mirroring the PyTorch module, for a sanity check."""
    b = emb_i.shape[0]
    reps = jnp.concatenate([emb_i, emb_j], axis=0).astype(jnp.float32)
    norms = jnp.maximum(jnp.linalg.norm(reps, axis=-1, keepdims=True), 1e-8)
    z = reps / norms
    sim = z @ z.T
    idx = jnp.arange(2 * b)
    positives = sim[idx, (idx + b) % (2 * b)]
    neg_mask = 1.0 - jnp.eye(2 * b, dtype=jnp.float32)
    denom = jnp.sum(neg_mask * jnp.exp(sim / temperature), axis=1)
    loss_partial = -jnp.log(jnp.exp(positives / temperature) / denom)
    return jnp.sum(loss_partial) / (2 * b)


if __name__ == "__main__":
    key = jax.random.PRNGKey(0)

    # Case 1: small, 8-aligned-after-pad batch (matches the module spec sizes).
    k1, k2 = jax.random.split(key)
    emb_i = jax.random.normal(k1, (4, 32), dtype=jnp.float32)
    emb_j = jax.random.normal(k2, (4, 32), dtype=jnp.float32)
    loss = contrastive_loss(emb_i, emb_j, temperature=0.5)
    jax.block_until_ready(loss)
    ref = _reference_loss(emb_i, emb_j, temperature=0.5)
    assert jnp.allclose(loss, ref, atol=1e-4, rtol=1e-4), (loss, ref)

    # Case 2: batch not a multiple of 8 (exercises the analytic pad removal).
    k3, k4 = jax.random.split(k1)
    emb_i2 = jax.random.normal(k3, (6, 48), dtype=jnp.float32)
    emb_j2 = jax.random.normal(k4, (6, 48), dtype=jnp.float32)
    loss2 = contrastive_loss(emb_i2, emb_j2, temperature=0.5)
    jax.block_until_ready(loss2)
    ref2 = _reference_loss(emb_i2, emb_j2, temperature=0.5)
    assert jnp.allclose(loss2, ref2, atol=1e-4, rtol=1e-4), (loss2, ref2)

    # Case 3: multi-tile grid (2x2) with column-axis accumulation.
    k5, k6 = jax.random.split(k3)
    emb_i3 = jax.random.normal(k5, (20, 40), dtype=jnp.float32)
    emb_j3 = jax.random.normal(k6, (20, 40), dtype=jnp.float32)
    loss3 = contrastive_loss(emb_i3, emb_j3, temperature=0.5)
    jax.block_until_ready(loss3)
    ref3 = _reference_loss(emb_i3, emb_j3, temperature=0.5)
    assert jnp.allclose(loss3, ref3, atol=1e-4, rtol=1e-4), (loss3, ref3)

    print("KERNEL_OK")
</pallas_src>

<mosaic_0001>
module attributes {stable_mosaic.version = 11 : i64} {
  func.func @_prenorm_kernel(%arg0: i32, %arg1: memref<8x128xf32, #tpu.memory_space<vmem>>, %arg2: memref<8x128xf32, #tpu.memory_space<vmem>>, %arg3: memref<8x128xf32, #tpu.memory_space<vmem>>, %arg4: memref<8x128xf32, #tpu.memory_space<vmem>>) attributes {dimension_semantics = [#tpu.dimension_semantics<parallel>], iteration_bounds = array<i64: 1>, scalar_prefetch = 0 : i64, scratch_operands = 0 : i64, tpu.core_type = #tpu.core_type<tc>, window_params = [{transform_indices = @transform_0, window_bounds = array<i64: 8, 128>}, {transform_indices = @transform_1, window_bounds = array<i64: 8, 128>}, {transform_indices = @transform_2, window_bounds = array<i64: 8, 128>}, {transform_indices = @transform_3, window_bounds = array<i64: 8, 128>}]} {
    %c0 = arith.constant 0 : index
    %c0_0 = arith.constant 0 : index
    %0 = vector.load %arg1[%c0, %c0_0] : memref<8x128xf32, #tpu.memory_space<vmem>>, vector<8x128xf32>
    %1 = arith.mulf %0, %0 : vector<8x128xf32>
    %cst = arith.constant dense<0.000000e+00> : vector<8xf32>
    %2 = vector.multi_reduction <add>, %1, %cst [1] : vector<8x128xf32> to vector<8xf32>
    %3 = vector.shape_cast %2 : vector<8xf32> to vector<8x1xf32>
    %cst_1 = arith.constant 1.000000e-16 : f32
    %4 = vector.broadcast %cst_1 : f32 to vector<8x1xf32>
    %5 = arith.maximumf %3, %4 : vector<8x1xf32>
    %6 = math.rsqrt %5 : vector<8x1xf32>
    %cst_2 = arith.constant 1.41421354 : f32
    %7 = vector.broadcast %cst_2 : f32 to vector<8x1xf32>
    %8 = arith.mulf %6, %7 : vector<8x1xf32>
    %9 = vector.broadcast %8 : vector<8x1xf32> to vector<8x128xf32>
    %10 = arith.mulf %0, %9 : vector<8x128xf32>
    %c0_3 = arith.constant 0 : index
    %c0_4 = arith.constant 0 : index
    %11 = vector.load %arg3[%c0_3, %c0_4] : memref<8x128xf32, #tpu.memory_space<vmem>>, vector<8x128xf32>
    tpu.vector_store %arg3[%c0_3, %c0_4], %10 {strides = array<i32>} : memref<8x128xf32, #tpu.memory_space<vmem>>, vector<8x128xf32>,
    %c0_5 = arith.constant 0 : index
    %c0_6 = arith.constant 0 : index
    %12 = vector.load %arg2[%c0_5, %c0_6] : memref<8x128xf32, #tpu.memory_space<vmem>>, vector<8x128xf32>
    %13 = arith.mulf %12, %12 : vector<8x128xf32>
    %cst_7 = arith.constant dense<0.000000e+00> : vector<8xf32>
    %14 = vector.multi_reduction <add>, %13, %cst_7 [1] : vector<8x128xf32> to vector<8xf32>
    %15 = vector.shape_cast %14 : vector<8xf32> to vector<8x1xf32>
    %cst_8 = arith.constant 1.000000e-16 : f32
    %16 = vector.broadcast %cst_8 : f32 to vector<8x1xf32>
    %17 = arith.maximumf %15, %16 : vector<8x1xf32>
    %18 = math.rsqrt %17 : vector<8x1xf32>
    %cst_9 = arith.constant 1.41421354 : f32
    %19 = vector.broadcast %cst_9 : f32 to vector<8x1xf32>
    %20 = arith.mulf %18, %19 : vector<8x1xf32>
    %21 = vector.broadcast %20 : vector<8x1xf32> to vector<8x128xf32>
    %22 = arith.mulf %12, %21 : vector<8x128xf32>
    %c0_10 = arith.constant 0 : index
    %c0_11 = arith.constant 0 : index
    %23 = vector.load %arg4[%c0_10, %c0_11] : memref<8x128xf32, #tpu.memory_space<vmem>>, vector<8x128xf32>
    tpu.vector_store %arg4[%c0_10, %c0_11], %22 {strides = array<i32>} : memref<8x128xf32, #tpu.memory_space<vmem>>, vector<8x128xf32>,
    return
  }
  func.func @transform_0(%arg0: i32) -> (i32, i32) {
    %c0_i32 = arith.constant 0 : i32
    %c0_i32_0 = arith.constant 0 : i32
    return %arg0, %c0_i32 : i32, i32
  }
  func.func @transform_1(%arg0: i32) -> (i32, i32) {
    %c0_i32 = arith.constant 0 : i32
    %c0_i32_0 = arith.constant 0 : i32
    return %arg0, %c0_i32 : i32, i32
  }
  func.func @transform_2(%arg0: i32) -> (i32, i32) {
    %c0_i32 = arith.constant 0 : i32
    %c0_i32_0 = arith.constant 0 : i32
    return %arg0, %c0_i32 : i32, i32
  }
  func.func @transform_3(%arg0: i32) -> (i32, i32) {
    %c0_i32 = arith.constant 0 : i32
    %c0_i32_0 = arith.constant 0 : i32
    return %arg0, %c0_i32 : i32, i32
  }
}

</mosaic_0001>

<bundles_post_ra>
// kernel: tpu_custom_call.1
= control target key start
LH: loop header
LB: loop body
LE: loop exit
PB: predicated region body
PF: predicated region fallthrough
CT: control target
= control target key end

     0   :  { %9 = vsyncpa [#allocation3], 0  ;;  %s261_s0 = inlined_call_operand.hbm [shape: f32[8,128], index: 0, kind: input, shape index: {}]   ;;  %s262_s1 = inlined_call_operand.hbm [shape: f32[8,128], index: 1, kind: input, shape index: {}]   ;;  %s263_s2 = inlined_call_operand.hbm [shape: f32[8,128], index: 2, kind: output, shape index: {0}]   ;;  %s264_s3 = inlined_call_operand.hbm [shape: f32[8,128], index: 3, kind: output, shape index: {1}]  }
   0x1   :  { %10 = vsyncpa [#allocation6], 0 }
   0x2   :  { %11 = vsyncpa [#allocation4], 0 }
   0x3   :  { %12 = vsyncpa [#allocation9], 0  ;;  %s18_s14 = sshll.u32 %s261_s0, 4  ;;  %s225_s15 = smov [#allocation2]   ;;  %s19_s14 = int_to_ptr.hbm [resolvable:$true] %s18_s14 }
   0x4   :  { %s20_s16 = sshll.u32 %s225_s15, 4  ;;  %s29_s19 = sshll.u32 %s262_s1, 4  ;;  %s21_s16 = int_to_ptr.vmem [resolvable:$true] %s20_s16  ;;  %s30_s19 = int_to_ptr.hbm [resolvable:$true] %s29_s19 }
   0x5   :  { %23 = dma.hbm_to_vmem [thread:$0]  %s19_s14, 128, %s21_s16, [#allocation3]  }
   0x6   :  { %s226_s20 = smov [#allocation5]  }
   0x7   :  { %s31_s21 = sshll.u32 %s226_s20, 4  ;;  %s32_s21 = int_to_ptr.vmem [resolvable:$true] %s31_s21 }
   0x8   :  { %34 = dma.hbm_to_vmem [thread:$0]  %s30_s19, 128, %s32_s21, [#allocation6]  }
   0x9   :  { %217 = dma.done.wait [#allocation3], 128  }
   0xa   :  { %218 = vsyncadd [#allocation3], 4294967168 }
   0xb   :  { %219 = dma.done.wait [#allocation6], 128  }
   0xc   :  { %220 = vsyncadd [#allocation6], 4294967168  ;;  %v43_v0 = vld [vmem:[#allocation2] sm:$0xff]  ;;  %v61_v2 = vld [vmem:[#allocation5] sm:$0xff]  ;;  %s227_s0 = smov [#allocation7]   ;;  %s86_s24 = sshll.u32 %s263_s2, 4  ;;  %s87_s24 = int_to_ptr.hbm [resolvable:$true] %s86_s24 }
   0xd   :  { %v44_v1 = vmul.f32 %v43_v0, %v43_v0  ;;  %v62_v3 = vmul.f32 %v61_v2, %v61_v2  ;;  %s84_s1 = sshll.u32 %s227_s0, 4  ;;  %s228_s25 = smov [#allocation8]   ;;  %s85_s1 = int_to_ptr.vmem [resolvable:$true] %s84_s1 }
   0xe   :  { %s95_s26 = sshll.u32 %s228_s25, 4  ;;  %s97_s29 = sshll.u32 %s264_s3, 4  ;;  %s96_s26 = int_to_ptr.vmem [resolvable:$true] %s95_s26  ;;  %s98_s29 = int_to_ptr.hbm [resolvable:$true] %s97_s29 }
   0xf   :  { %45 = vadd.xlane.f32.xlu0 %v44_v1 }
  0x17   :  { %63 = vadd.xlane.f32.xlu0 %v62_v3 }
  0x82   :  { %v46_v4 = vpop.xlane.xlu0 %45 }
  0x83   :  { %v47_v5 = vmax.f32 %v46_v4, 1e-16 }
  0x85   :  { %117 = vrsqrt.f32 %v47_v5  ;;  %vm54_vm1 = vweird.f32 %v47_v5 }
  0x8a   :  { %v64_v6 = vpop.xlane.xlu0 %63 }
  0x8b   :  { %v118_v7 = vpop.eup %117  ;;  %v65_v8 = vmax.f32 %v64_v6, 1e-16 }
  0x8c   :  { %v49_v9 = vmul.f32 %v118_v7, %v47_v5  ;;  %vm55_vm0 = vweird.f32 %v118_v7 }
  0x8d   :  { %119 = vrsqrt.f32 %v65_v8  ;;  %vm56_vm2 = vmor %vm54_vm1, %vm55_vm0  ;;  %vm72_vm4 = vweird.f32 %v65_v8 }
  0x8e   :  { %v50_v10 = vmul.f32 %v118_v7, %v49_v9 }
  0x90   :  { %v51_v11 = vmul.f32 0.5, %v50_v10 }
  0x92   :  { %v52_v12 = vsub.f32 1.5, %v51_v11 }
  0x93   :  { %v120_v13 = vpop.eup %119 }
  0x94   :  { %v53_v14 = vmul.f32 %v118_v7, %v52_v12  ;;  %v67_v15 = vmul.f32 %v120_v13, %v65_v8  ;;  %vm73_vm3 = vweird.f32 %v120_v13 }
  0x95   :  { %vm74_vm5 = vmor %vm72_vm4, %vm73_vm3 }
  0x96   :  { %v68_v16 = vmul.f32 %v120_v13, %v67_v15  ;;  %v57_v17 = vsel %vm56_vm2, %v118_v7, %v53_v14 }
  0x97   :  { %v58_v18 = vmul.f32 1.4142135, %v57_v17 }
  0x98   :  { %v69_v19 = vmul.f32 0.5, %v68_v16 }
  0x99   :  { %v59_v20 = vmul.f32 %v58_v18, %v43_v0 }
  0x9a   :  { %v70_v21 = vsub.f32 1.5, %v69_v19 }
  0x9b   :  { %60 = vst [vmem:[#allocation7] sm:$0xff] %v59_v20 }
  0x9c   :  { %v71_v22 = vmul.f32 %v120_v13, %v70_v21  ;;  %89 = dma.vmem_to_hbm [thread:$0]  %s85_s1, 128, %s87_s24, [#allocation4]  }
  0x9e   :  { %v75_v23 = vsel %vm74_vm5, %v120_v13, %v71_v22 }
  0x9f   :  { %v76_v24 = vmul.f32 1.4142135, %v75_v23 }
  0xa1   :  { %v77_v25 = vmul.f32 %v76_v24, %v61_v2 }
  0xa3   :  { %78 = vst [vmem:[#allocation8] sm:$0xff] %v77_v25 }
  0xa4   :  { %100 = dma.vmem_to_hbm [thread:$0]  %s96_s26, 128, %s98_s29, [#allocation9]  }
  0xa5   :  { %221 = dma.done.wait [#allocation4], 128  }
  0xa6   :  { %222 = vsyncadd [#allocation4], 4294967168 }
  0xa7   :  { %223 = dma.done.wait [#allocation9], 128  }
  0xa8   :  { %224 = vsyncadd [#allocation9], 4294967168 }
  0xa9   :  { %109 = vsyncpa [#allocation3], 1 }
  0xaa   :  { %110 = vsyncpa [#allocation6], 1 }
  0xab   :  { %111 = vsyncpa [#allocation4], 1 }
  0xac   :  { %112 = vsyncpa [#allocation9], 1 }

</bundles_post_ra>
